<compile_context>
chip_gen: v7x
topology: tpu7x:2x2x1
jax: 0.10.0
libtpu: 0.0.40
codegen_flags: <defaults>
</compile_context>

<pallas_src>
import jax
import jax.numpy as jnp
from jax import lax
from jax.experimental import pallas as pl
from jax.experimental.pallas import tpu as pltpu


def _round_up(x, m):
    return ((x + m - 1) // m) * m


def _lora_kernel(x_ref, wd_ref, wu_ref, o_ref):
    # x_ref: (tm, in)  wd_ref: (rank, in)  wu_ref: (rank, n_pad)  o_ref: (tm, n_pad)
    x = x_ref[...].astype(jnp.bfloat16)                       # per-tile cast (VPU)
    # down = x @ wd.T : contract in_features (the lane dim of both operands).
    down = lax.dot_general(x, wd_ref[...],
                           dimension_numbers=(((1,), (1,)), ((), ())),
                           preferred_element_type=jnp.float32)   # (tm, rank) f32
    up = jnp.dot(down.astype(jnp.bfloat16), wu_ref[...],
                 preferred_element_type=jnp.float32)             # (tm, n_pad) f32
    o_ref[...] = up.astype(o_ref.dtype)


def lora_linear(hidden_states, down_weight, up_weight, *, tm=None):
    """Pallas equivalent of LoRALinearLayer.forward.

    hidden_states: (..., in_features), any float dtype
    down_weight:   (rank, in_features)   -- nn.Linear(in_features, rank).weight
    up_weight:     (out_features, rank)  -- nn.Linear(rank, out_features).weight
    returns:       (..., out_features), same dtype as hidden_states
    """
    orig_dtype = hidden_states.dtype
    in_features = hidden_states.shape[-1]
    rank = down_weight.shape[0]
    out_features = up_weight.shape[0]

    lead_shape = hidden_states.shape[:-1]
    x2d = hidden_states.reshape(-1, in_features)   # native dtype; no HBM pre-pass
    M = x2d.shape[0]

    # Lane-dense output slab.
    n_pad = _round_up(out_features, 128)

    # ---- generation-aware VMEM budgets ----
    try:
        vmem_cap = int(pltpu.get_tpu_info().vmem_capacity_bytes)
    except Exception:
        vmem_cap = 64 << 20                       # conservative (v7x-safe) fallback
    if vmem_cap >= (96 << 20):                    # v5e / v6e: 128 MiB VMEM parts
        tile_budget = 90 << 20
        tm_cap = 1024 if tm is None else tm
        limit_cap = 100 << 20
    else:                                         # v7x: 64 MiB per TensorCore
        tile_budget = 44 << 20
        tm_cap = 512 if tm is None else tm
        limit_cap = 56 << 20

    x_bytes = jnp.dtype(x2d.dtype).itemsize
    o_bytes = jnp.dtype(orig_dtype).itemsize
    # Per-row VMEM footprint: double-buffered x/out tiles + in-kernel
    # temporaries (bf16 copy of x, f32 result of the up matmul, lane-padded
    # (tm, rank)->(tm, 128) down intermediate in f32 + its bf16 copy).
    per_row = (2 * in_features * x_bytes + 2 * n_pad * o_bytes
               + 2 * in_features + 4 * n_pad + 128 * 6)
    rank_pad = _round_up(rank, 8)
    weight_bytes = 2 * rank_pad * (in_features + n_pad) * 2    # bf16, double-buffered

    # ---- balanced, 8-aligned M tiling ----
    tm_eff = _round_up(pl.cdiv(M, pl.cdiv(M, tm_cap)), 8)
    # Megacore: guarantee >=2 grid programs so the parallel axis can split
    # across v7x's two TensorCores (an extra ~0.35us grid step elsewhere).
    if M > 16 and pl.cdiv(M, tm_eff) < 2:
        tm_eff = _round_up(pl.cdiv(M, 2), 8)
    # Shrink until the tile footprint fits the generation budget.
    while tm_eff > 8 and tm_eff * per_row + weight_bytes > tile_budget:
        tm_eff = _round_up(tm_eff // 2, 8)
    if tm_eff >= M:
        tm_eff = M          # single full block (legal even when M % 8 != 0)
    grid_m = pl.cdiv(M, tm_eff)

    vmem_limit = tm_eff * per_row + weight_bytes + (2 << 20)   # + slack
    vmem_limit = int(min(max(vmem_limit, 8 << 20), limit_cap))

    # Tiny constant weights in bf16. wd kept in natural (rank, in) orientation
    # (lane dim = in_features, dense); wu transposed + lane-padded to n_pad.
    wd = down_weight.astype(jnp.bfloat16)                      # (rank, in)
    wu_t = up_weight.T.astype(jnp.bfloat16)                    # (rank, out)
    if n_pad != out_features:
        wu_t = jnp.pad(wu_t, ((0, 0), (0, n_pad - out_features)))

    out2d = pl.pallas_call(
        _lora_kernel,
        out_shape=jax.ShapeDtypeStruct((M, n_pad), orig_dtype),
        grid_spec=pltpu.PrefetchScalarGridSpec(
            num_scalar_prefetch=0,
            grid=(grid_m,),
            in_specs=[
                pl.BlockSpec((tm_eff, in_features), lambda i: (i, 0)),
                # Constant block index -> not re-fetched across grid steps;
                # the default second buffer is only a few KiB, so no
                # pipeline_mode override (keeps lowering maximally portable).
                pl.BlockSpec((rank, in_features), lambda i: (0, 0)),
                pl.BlockSpec((rank, n_pad), lambda i: (0, 0)),
            ],
            out_specs=pl.BlockSpec((tm_eff, n_pad), lambda i: (i, 0)),
        ),
        compiler_params=pltpu.CompilerParams(
            dimension_semantics=("parallel",),      # megacore sharding on v7x
            vmem_limit_bytes=vmem_limit),
    )(x2d, wd, wu_t)

    if n_pad != out_features:
        # TODO(synk): callers that immediately add/consume this could take the
        # lane-padded slab and skip this compaction pass.
        out2d = out2d[:, :out_features]
    return out2d.reshape(*lead_shape, out_features)


def init_lora_params(key, in_features, out_features, rank=4, dtype=jnp.float32):
    """Deterministic init matching the PyTorch module."""
    if rank > min(in_features, out_features):
        raise ValueError(
            f"LoRA rank {rank} must be less or equal than {min(in_features, out_features)}")
    # nn.init.normal_(self.down.weight, std=1/rank)
    down_weight = (jax.random.normal(key, (rank, in_features), dtype) / rank).astype(dtype)
    # nn.init.zeros_(self.up.weight)
    up_weight = jnp.zeros((out_features, rank), dtype)
    return down_weight, up_weight


if __name__ == "__main__":
    key = jax.random.PRNGKey(0)
    k_w, k_x, k_u, k_x2 = jax.random.split(key, 4)

    batch, seq, in_features, out_features, rank = 2, 8, 32, 32, 4

    down_w, up_w = init_lora_params(k_w, in_features, out_features, rank)
    # up_w is all-zero per the module init; also use a non-trivial up weight
    # so the kernel math is actually exercised.
    up_w_nz = jax.random.normal(k_u, (out_features, rank), jnp.float32) * 0.02

    x = jax.random.normal(k_x, (batch, seq, in_features), jnp.bfloat16)

    # As-initialized module (up == 0 -> output == 0).
    out_zero = jax.block_until_ready(lora_linear(x, down_w, up_w))

    # Non-trivial check against a pure-JAX reference (bf16 MXU operands with
    # f32 accumulation in-kernel -> slightly loosened tolerance).
    out = jax.block_until_ready(lora_linear(x, down_w, up_w_nz))
    ref = ((x.astype(jnp.float32) @ down_w.T) @ up_w_nz.T).astype(x.dtype)

    assert out.shape == (batch, seq, out_features)
    assert out.dtype == x.dtype
    assert jnp.all(out_zero == 0)
    assert jnp.allclose(out.astype(jnp.float32), ref.astype(jnp.float32),
                        atol=2e-2, rtol=2e-2)

    # Second case: f32 input with M (=15) that is neither 8-aligned nor a tile
    # multiple (exercises the partial-block path and the lane-padded output).
    x2 = jax.random.normal(k_x2, (3, 5, in_features), jnp.float32)
    out2 = jax.block_until_ready(lora_linear(x2, down_w, up_w_nz))
    ref2 = (x2 @ down_w.T) @ up_w_nz.T
    assert out2.shape == (3, 5, out_features)
    assert out2.dtype == x2.dtype
    assert jnp.allclose(out2, ref2, atol=2e-2, rtol=2e-2)

    print("KERNEL_OK")
</pallas_src>

<mosaic_0001>
module attributes {stable_mosaic.version = 11 : i64} {
  func.func @_lora_kernel(%arg0: i32, %arg1: memref<16x32xbf16, #tpu.memory_space<vmem>>, %arg2: memref<4x32xbf16, #tpu.memory_space<vmem>>, %arg3: memref<4x128xbf16, #tpu.memory_space<vmem>>, %arg4: memref<16x128xbf16, #tpu.memory_space<vmem>>) attributes {dimension_semantics = [#tpu.dimension_semantics<parallel>], iteration_bounds = array<i64: 1>, scalar_prefetch = 0 : i64, scratch_operands = 0 : i64, tpu.core_type = #tpu.core_type<tc>, window_params = [{transform_indices = @transform_0, window_bounds = array<i64: 16, 32>}, {pipeline_mode = #tpu.pipeline_mode<synchronous>, transform_indices = @transform_1, window_bounds = array<i64: 4, 32>}, {pipeline_mode = #tpu.pipeline_mode<synchronous>, transform_indices = @transform_2, window_bounds = array<i64: 4, 128>}, {transform_indices = @transform_3, window_bounds = array<i64: 16, 128>}]} {
    %c0 = arith.constant 0 : index
    %c0_0 = arith.constant 0 : index
    %0 = vector.load %arg1[%c0, %c0_0] : memref<16x32xbf16, #tpu.memory_space<vmem>>, vector<16x32xbf16>
    %c0_1 = arith.constant 0 : index
    %c0_2 = arith.constant 0 : index
    %1 = vector.load %arg2[%c0_1, %c0_2] : memref<4x32xbf16, #tpu.memory_space<vmem>>, vector<4x32xbf16>
    %cst = arith.constant dense<0.000000e+00> : vector<16x4xf32>
    %2 = tpu.matmul %0, %1, %cst {dimension_numbers = #tpu.dot_dimension_numbers<[1], [1], [0], [0], [0, 0, 1, 0], [], []>} : vector<16x32xbf16>, vector<4x32xbf16>, vector<16x4xf32> -> vector<16x4xf32>
    %3 = arith.truncf %2 : vector<16x4xf32> to vector<16x4xbf16>
    %c0_3 = arith.constant 0 : index
    %c0_4 = arith.constant 0 : index
    %4 = vector.load %arg3[%c0_3, %c0_4] : memref<4x128xbf16, #tpu.memory_space<vmem>>, vector<4x128xbf16>
    %cst_5 = arith.constant dense<0.000000e+00> : vector<16x128xf32>
    %5 = tpu.matmul %3, %4, %cst_5 {dimension_numbers = #tpu.dot_dimension_numbers<[1], [0], [0], [1], [0, 0, 1, 1], [], []>} : vector<16x4xbf16>, vector<4x128xbf16>, vector<16x128xf32> -> vector<16x128xf32>
    %6 = arith.truncf %5 : vector<16x128xf32> to vector<16x128xbf16>
    %c0_6 = arith.constant 0 : index
    %c0_7 = arith.constant 0 : index
    %7 = vector.load %arg4[%c0_6, %c0_7] : memref<16x128xbf16, #tpu.memory_space<vmem>>, vector<16x128xbf16>
    tpu.vector_store %arg4[%c0_6, %c0_7], %6 {strides = array<i32>} : memref<16x128xbf16, #tpu.memory_space<vmem>>, vector<16x128xbf16>,
    return
  }
  func.func @transform_0(%arg0: i32) -> (i32, i32) {
    %c0_i32 = arith.constant 0 : i32
    %c0_i32_0 = arith.constant 0 : i32
    return %arg0, %c0_i32 : i32, i32
  }
  func.func @transform_1(%arg0: i32) -> (i32, i32) {
    %c0_i32 = arith.constant 0 : i32
    %c0_i32_0 = arith.constant 0 : i32
    %c0_i32_1 = arith.constant 0 : i32
    return %c0_i32, %c0_i32_0 : i32, i32
  }
  func.func @transform_2(%arg0: i32) -> (i32, i32) {
    %c0_i32 = arith.constant 0 : i32
    %c0_i32_0 = arith.constant 0 : i32
    %c0_i32_1 = arith.constant 0 : i32
    return %c0_i32, %c0_i32_0 : i32, i32
  }
  func.func @transform_3(%arg0: i32) -> (i32, i32) {
    %c0_i32 = arith.constant 0 : i32
    %c0_i32_0 = arith.constant 0 : i32
    return %arg0, %c0_i32 : i32, i32
  }
}

</mosaic_0001>

<bundles_post_ra>
// kernel: tpu_custom_call.1
= control target key start
LH: loop header
LB: loop body
LE: loop exit
PB: predicated region body
PF: predicated region fallthrough
CT: control target
= control target key end

     0   :  { %8 = vsyncpa [#allocation3], 0  ;;  %s309_s0 = inlined_call_operand.hbm [shape: bf16[16,32], index: 0, kind: input, shape index: {}]   ;;  %s310_s1 = inlined_call_operand.vmem [shape: bf16[4,32], index: 1, kind: input, shape index: {}]   ;;  %s311_s2 = inlined_call_operand.vmem [shape: bf16[4,128], index: 2, kind: input, shape index: {}]   ;;  %s312_s3 = inlined_call_operand.hbm [shape: bf16[16,128], index: 3, kind: output, shape index: {}]  }
   0x1   :  { %9 = vsyncpa [#allocation4], 0  ;;  %s247_s12 = smov [#allocation2]   ;;  %s199_s16 = scalar_lea.hbm %s309_s0, 128 }
   0x2   :  { %s15_s13 = sshll.u32 %s247_s12, 4  ;;  %p200_p0 = scmp.ne.s32.totalorder %s309_s0, %s199_s16  ;;  %s16_s13 = int_to_ptr.vmem [resolvable:$true] %s15_s13 }
   0x3   :  { %p203_p1 = scmp.lt.u32.totalorder %s199_s16, %s309_s0 }
   0x5   :  { %p205_p2 = pnand %p203_p1, %p200_p0 }
   0x7   :  { %208 = shalt.err (!%p205_p2)
}
   0x8   :  { %s209_s21 = scalar_lea.vmem %s16_s13, 128  ;;  %p214_p4 = scmp.lt.s32.totalorder %s16_s13, %s16_s13 }
   0x9   :  { %p210_p3 = scmp.ne.s32.totalorder %s16_s13, %s209_s21  ;;  %p215_p5 = scmp.lt.s32.totalorder %s209_s21, %s209_s21 }
   0xb   :  { %p216_p6 = por %p215_p5, %p214_p4 }
   0xd   :  { %p217_p7 = pnand %p216_p6, %p210_p3 }
   0xf   :  { %220 = shalt.err (!%p217_p7)
}
  0x10   :  { %s248_s22 = smov 64   ;;  %s249_s23 = smov 4  }
  0x11   :  { %21 = dma.hbm_to_vmem [thread:$0]  %s309_s0, 128, %s16_s13, [#allocation3], %s248_s22, %s248_s22, %s249_s23  }
  0x12   :  { %243 = dma.done.wait [#allocation3], 128  }
  0x13   :  { %244 = vsyncadd [#allocation3], 4294967168  ;;  %v250_v0 = vmov 0.0   ;;  %vm251_vm0 = vmmov 0   ;;  %vm38_vm1 = vcmask 261120   ;;  %v198_v3 = vld [vmem:[#allocation2] sm:$0xff]  }
  0x14   :  { %180 = vmatprep.subr.bf16.mxu0 %v250_v0  ;;  %182 = vmatprep.mubr.msk.bf16.mxu0 %vm251_vm0, %v250_v0  ;;  %v32_v1 = vld [vmem:[%s310_s1] sm:$0x3]  ;;  %vm92_vm2 = vcmask 1041408   ;;  %vm88_vm3 = vcmask 31744   ;;  %s252_s0 = smov [#allocation5]  }
  0x15   :  { %186 = vmatprep.subr.bf16.mxu1 %v250_v0  ;;  %188 = vmatprep.mubr.msk.bf16.mxu1 %vm251_vm0, %v250_v0  ;;  %v43_v2 = vsel %vm38_vm1, %v32_v1, 0  ;;  %v87_v4 = vld [vmem:[%s311_s2] sm:$0x3]  ;;  %s152_s1 = sshll.u32 %s252_s0, 4  ;;  %s153_s1 = int_to_ptr.vmem [resolvable:$true] %s152_s1 }
  0x16   :  { %181 = vmatpush3.bf16.xpose.msra.mxu0 %v43_v2  ;;  %v94_v5 = vsel %vm92_vm2, %v87_v4, 0  ;;  %s221_s2 = scalar_lea.vmem %s153_s1, 128  ;;  %p226_p9 = scmp.lt.s32.totalorder %s153_s1, %s153_s1 }
  0x17   :  { %187 = vmatpush3.bf16.msra.mxu1 %v94_v5  ;;  %p222_p8 = scmp.ne.s32.totalorder %s153_s1, %s221_s2  ;;  %p227_p10 = scmp.lt.s32.totalorder %s221_s2, %s221_s2 }
  0x19   :  { %p228_p11 = por %p227_p10, %p226_p9 }
  0x1b   :  { %p229_p12 = pnand %p228_p11, %p222_p8 }
  0x1d   :  { %183 = vmatmul.mubr.msk.bf16.vlgmr.msra.gmra.mrb[0].mxu0 %vm38_vm1, %v198_v3 }
  0xf0   :  { %v79_v6 = vpop.f32.mrb[0].mxu0 }
  0xf1   :  { %v184_v7 = vpop.f32.mrb[1].mxu0 }
  0xf2   :  { %v82_v8 = vpop.f32.mrb[2].mxu0 }
  0xf3   :  { %v86_v9 = vpack.c.bf16 %v82_v8, %v79_v6  ;;  %v185_v10 = vpop.f32.mrb[3].mxu0 }
  0xf5   :  { %189 = vmatmul.mubr.msk.bf16.vlgmr.msra.gmra.mrb[0].mxu1 %vm88_vm3, %v86_v9 }
 0x1c8   :  { %v130_v11 = vpop.f32.mrb[0].mxu1 }
 0x1c9   :  { %v190_v12 = vpop.f32.mrb[1].mxu1 }
 0x1ca   :  { %v133_v13 = vpop.f32.mrb[2].mxu1 }
 0x1cb   :  { %v174_v14 = vpack.c.bf16 %v133_v13, %v130_v11  ;;  %v191_v15 = vpop.f32.mrb[3].mxu1 }
 0x1cd   :  { %175 = vst [vmem:[#allocation5] sm:$0xff] %v174_v14  }
 0x1ce   :  { %232 = shalt.err (!%p229_p12)
}
 0x1cf   :  { %s233_s5 = scalar_lea.hbm %s312_s3, 128 }
 0x1d0   :  { %p234_p13 = scmp.ne.s32.totalorder %s312_s3, %s233_s5  ;;  %p237_p0 = scmp.lt.u32.totalorder %s233_s5, %s312_s3 }
 0x1d2   :  { %p239_p1 = pnand %p237_p0, %p234_p13 }
 0x1d4   :  { %242 = shalt.err (!%p239_p1)
}
 0x1d5   :  { %158 = dma.vmem_to_hbm [thread:$0]  %s153_s1, 128, %s312_s3, [#allocation4], %s248_s22, %s248_s22, %s249_s23  }
 0x1d6   :  { %245 = dma.done.wait [#allocation4], 128  }
 0x1d7   :  { %246 = vsyncadd [#allocation4], 4294967168 }
 0x1d8   :  { %162 = vsyncpa [#allocation3], 1 }
 0x1d9   :  { %163 = vsyncpa [#allocation4], 1 }

</bundles_post_ra>
